<compile_context>
chip_gen: v7x
topology: tpu7x:2x2x1
jax: 0.10.0
libtpu: 0.0.40
codegen_flags: <defaults>
</compile_context>

<pallas_src>
from math import sqrt

import jax
import jax.numpy as jnp
from jax.experimental import pallas as pl
from jax.experimental.pallas import tpu as pltpu


def _lora_kernel(w_ref, b_ref, a_ref, o_ref):
    # z = B @ A on the MXU (f32 accumulation); residual add in f32, cast once.
    z = jnp.dot(b_ref[...], a_ref[...], preferred_element_type=jnp.float32)
    o_ref[...] = (w_ref[...].astype(jnp.float32) + z).astype(o_ref.dtype)


def _divisors(n):
    return [d for d in range(1, n + 1) if n % d == 0]


def _tile_cost_bytes(tm, tn, rank, itemsize):
    # weight + output tiles (2-deep pipeline each) + resident A + tiny B.
    return (4 * tm * tn + 2 * rank * tn + 2 * tm * rank) * itemsize


def _choose_tiles(out_features, in_features, rank, itemsize,
                  vmem_budget_bytes=40 << 20):
    """Pick (tm, tn) tiles for the (out_features, in_features) output."""
    # Packed-sublane granularity: f32 -> 8 rows, bf16 -> 16, int8/fp8 -> 32.
    sub = max(8, 32 // max(itemsize, 1))

    # Column tile: prefer full rows (lane-dense stores, A fetched once);
    # otherwise the largest multiple-of-128 divisor that fits the budget.
    tn_opts = sorted(
        (d for d in _divisors(in_features) if d == in_features or d % 128 == 0),
        reverse=True)
    tn = next((t for t in tn_opts
               if _tile_cost_bytes(sub, t, rank, itemsize) <= vmem_budget_bytes),
              tn_opts[-1])

    # Row tile: as large as fits the budget, a multiple of the packed sublane
    # count, preferring >= 2 grid steps so v7x can split across its 2 TCs.
    tm_opts = sorted(
        (d for d in _divisors(out_features) if d == out_features or d % sub == 0),
        reverse=True)
    fitting = [t for t in tm_opts
               if _tile_cost_bytes(t, tn, rank, itemsize) <= vmem_budget_bytes]
    if not fitting:
        fitting = [tm_opts[-1]]
    tm = next((t for t in fitting if out_features // t >= 2), fitting[0])
    return tm, tn


def lora_forward(weight: jax.Array, lora_b: jax.Array, lora_a: jax.Array,
                 *, tm: int | None = None, tn: int | None = None,
                 donate_weight: bool = False) -> jax.Array:
    """Compute weight + lora_b @ lora_a with a tiled Pallas kernel."""
    out_features, in_features = weight.shape
    rank = lora_a.shape[0]
    assert rank > 0, "Rank must be greater than 0."
    assert lora_b.shape == (out_features, rank)
    assert lora_a.shape == (rank, in_features)

    itemsize = jnp.dtype(weight.dtype).itemsize
    auto_tm, auto_tn = _choose_tiles(out_features, in_features, rank, itemsize)
    tm = auto_tm if tm is None else tm
    tn = auto_tn if tn is None else tn
    assert out_features % tm == 0 and in_features % tn == 0

    # Column blocks (j) are the OUTER grid axis so every lora_a block is
    # fetched exactly once; with tn == in_features that is one DMA total.
    grid = (in_features // tn, out_features // tm)

    # Only raise the scoped-VMEM limit when the tiles actually need it, and
    # stay well under v7x's 64 MiB physical VMEM.
    vmem_needed = _tile_cost_bytes(tm, tn, rank, itemsize)
    vmem_limit = None
    if vmem_needed > (30 << 20):
        vmem_limit = min(int(vmem_needed * 3 // 2), 56 << 20)

    return pl.pallas_call(
        _lora_kernel,
        out_shape=jax.ShapeDtypeStruct((out_features, in_features), weight.dtype),
        grid_spec=pltpu.PrefetchScalarGridSpec(
            num_scalar_prefetch=0,
            grid=grid,
            in_specs=[
                pl.BlockSpec((tm, tn), lambda j, i: (i, j)),      # weight tile
                pl.BlockSpec((tm, rank), lambda j, i: (i, 0)),    # lora_b rows
                pl.BlockSpec((rank, tn), lambda j, i: (0, j)),    # lora_a cols
            ],
            out_specs=pl.BlockSpec((tm, tn), lambda j, i: (i, j)),
        ),
        compiler_params=pltpu.CompilerParams(
            dimension_semantics=("parallel", "parallel"),
            vmem_limit_bytes=vmem_limit),
        # Optional in-place merge: output matches weight's shape/dtype, so
        # aliasing avoids a second (out_features, in_features) HBM allocation.
        input_output_aliases=({0: 0} if donate_weight else {}),
    )(weight, lora_b, lora_a)


if __name__ == "__main__":
    # Small but layout-friendly shapes (tiles auto-select to full rows).
    in_features = 512
    out_features = 256
    rank = 8

    key = jax.random.PRNGKey(0)
    k_w, k_a, k_b = jax.random.split(key, 3)

    weight = jax.random.normal(k_w, (out_features, in_features), dtype=jnp.float32)
    lora_a = jax.random.normal(k_a, (rank, in_features), dtype=jnp.float32) / sqrt(rank)

    # Faithful init: lora_b == zeros  =>  forward(weight) == weight.
    lora_b_zero = jnp.zeros((out_features, rank), dtype=jnp.float32)
    out_zero = jax.block_until_ready(lora_forward(weight, lora_b_zero, lora_a))
    assert out_zero.shape == (out_features, in_features)
    assert jnp.allclose(out_zero, weight), "zero-init LoRA must be identity"

    # Non-trivial B so the matmul path is exercised numerically.
    lora_b = jax.random.normal(k_b, (out_features, rank), dtype=jnp.float32) * 0.02
    out = jax.block_until_ready(lora_forward(weight, lora_b, lora_a))
    ref = weight + lora_b @ lora_a
    assert jnp.allclose(out, ref, atol=1e-5, rtol=1e-5), "f32 mismatch vs reference"

    # bf16 path (exercises the packed-sublane tile constraint and f32 add).
    w16, a16, b16 = (x.astype(jnp.bfloat16) for x in (weight, lora_a, lora_b))
    out16 = jax.block_until_ready(lora_forward(w16, b16, a16))
    ref16 = (w16.astype(jnp.float32)
             + b16.astype(jnp.float32) @ a16.astype(jnp.float32)).astype(jnp.bfloat16)
    assert jnp.allclose(out16.astype(jnp.float32), ref16.astype(jnp.float32),
                        atol=5e-2, rtol=5e-2), "bf16 mismatch vs reference"

    print("KERNEL_OK")
</pallas_src>

<mosaic_0001>
module attributes {stable_mosaic.version = 11 : i64} {
  func.func @_lora_kernel(%arg0: i32, %arg1: i32, %arg2: memref<128x512xf32, #tpu.memory_space<vmem>>, %arg3: memref<128x8xf32, #tpu.memory_space<vmem>>, %arg4: memref<8x512xf32, #tpu.memory_space<vmem>>, %arg5: memref<128x512xf32, #tpu.memory_space<vmem>>) attributes {dimension_semantics = [#tpu.dimension_semantics<parallel>, #tpu.dimension_semantics<parallel>], iteration_bounds = array<i64: 1, 2>, scalar_prefetch = 0 : i64, scratch_operands = 0 : i64, tpu.core_type = #tpu.core_type<tc>, window_params = [{transform_indices = @transform_0, window_bounds = array<i64: 128, 512>}, {transform_indices = @transform_1, window_bounds = array<i64: 128, 8>}, {transform_indices = @transform_2, window_bounds = array<i64: 8, 512>}, {transform_indices = @transform_3, window_bounds = array<i64: 128, 512>}]} {
    %c0 = arith.constant 0 : index
    %c0_0 = arith.constant 0 : index
    %0 = vector.load %arg3[%c0, %c0_0] : memref<128x8xf32, #tpu.memory_space<vmem>>, vector<128x8xf32>
    %c0_1 = arith.constant 0 : index
    %c0_2 = arith.constant 0 : index
    %1 = vector.load %arg4[%c0_1, %c0_2] : memref<8x512xf32, #tpu.memory_space<vmem>>, vector<8x512xf32>
    %cst = arith.constant dense<0.000000e+00> : vector<128x512xf32>
    %2 = tpu.matmul %0, %1, %cst {dimension_numbers = #tpu.dot_dimension_numbers<[1], [0], [0], [1], [0, 0, 1, 1], [], []>} : vector<128x8xf32>, vector<8x512xf32>, vector<128x512xf32> -> vector<128x512xf32>
    %c0_3 = arith.constant 0 : index
    %c0_4 = arith.constant 0 : index
    %3 = vector.load %arg2[%c0_3, %c0_4] : memref<128x512xf32, #tpu.memory_space<vmem>>, vector<128x512xf32>
    %4 = arith.addf %3, %2 : vector<128x512xf32>
    %c0_5 = arith.constant 0 : index
    %c0_6 = arith.constant 0 : index
    %5 = vector.load %arg5[%c0_5, %c0_6] : memref<128x512xf32, #tpu.memory_space<vmem>>, vector<128x512xf32>
    tpu.vector_store %arg5[%c0_5, %c0_6], %4 {strides = array<i32>} : memref<128x512xf32, #tpu.memory_space<vmem>>, vector<128x512xf32>,
    return
  }
  func.func @transform_0(%arg0: i32, %arg1: i32) -> (i32, i32) {
    %c0_i32 = arith.constant 0 : i32
    return %arg1, %arg0 : i32, i32
  }
  func.func @transform_1(%arg0: i32, %arg1: i32) -> (i32, i32) {
    %c0_i32 = arith.constant 0 : i32
    %c0_i32_0 = arith.constant 0 : i32
    return %arg1, %c0_i32 : i32, i32
  }
  func.func @transform_2(%arg0: i32, %arg1: i32) -> (i32, i32) {
    %c0_i32 = arith.constant 0 : i32
    %c0_i32_0 = arith.constant 0 : i32
    return %c0_i32, %arg0 : i32, i32
  }
  func.func @transform_3(%arg0: i32, %arg1: i32) -> (i32, i32) {
    %c0_i32 = arith.constant 0 : i32
    return %arg1, %arg0 : i32, i32
  }
}

</mosaic_0001>

<bundles_post_ra>
// kernel: tpu_custom_call.1
= control target key start
LH: loop header
LB: loop body
LE: loop exit
PB: predicated region body
PF: predicated region fallthrough
CT: control target
= control target key end

     0   :  { %8 = vsyncpa [#allocation3], 0  ;;  %s1644_s0 = inlined_call_operand.hbm [shape: f32[256,512], index: 0, kind: input, shape index: {}]   ;;  %s1645_s1 = inlined_call_operand.vmem [shape: f32[256,8], index: 1, kind: input, shape index: {}]   ;;  %s1646_s2 = inlined_call_operand.vmem [shape: f32[8,512], index: 2, kind: input, shape index: {}]   ;;  %s1647_s3 = inlined_call_operand.hbm [shape: f32[256,512], index: 3, kind: output, shape index: {}]  }
   0x1   :  { %10 = vsyncpa [#allocation3 + $0x1], 0 }
   0x2   :  { %11 = vsyncpa [#allocation4], 0 }
   0x3   :  { %13 = vsyncpa [#allocation4 + $0x1], 0  ;;  %s1234_s12 = smov 0   ;;  %s1236_s13 = smov 0  }
   0x4   :  { %s1238_s14 = smov 0   ;;  %s1240_s15 = smov 0  }
   0x5   :  { %s1242_s16 = smov 0   ;;  %s1244_s17 = smov 0  }
   0x6 LB: > { %s970_s18 = sadd.s32 4294967295, %s1205_s17   ;;  %s971_s19 = sadd.s32 4294967294, %s1205_s17   ;;  %s1205_s17 = sphi %s1244_s17, %s19_s17   ;;  %s1201_s16 = sphi %s1242_s16, %s1662_s16   ;;  %s1197_s15 = sphi %s1240_s15, %s1661_s15   ;;  %s1193_s14 = sphi %s1238_s14, %s1660_s14   ;;  %s1189_s13 = sphi %s1236_s13, %s1659_s13   ;;  %s1185_s12 = sphi %s1234_s12, %s1658_s12  }
   0x7   : > { %s28_s20 = sadd.s32 1, %s1201_s16  ;;  %s40_s21 = sadd.s32 1, %s1193_s14 }
   0x8   : > { %p29_p0 = scmp.ge.s32.totalorder %s28_s20, 2  ;;  %p47_p1 = scmp.ne.s32.totalorder %s1193_s14, %s1189_s13 }
   0x9   : > { %p48_p2 = scmp.eq.s32.totalorder %s1205_s17, 0  ;;  %p53_p3 = scmp.ne.s32.totalorder %s1189_s13, %s1185_s12 }
   0xa   : > { %s1664_s20 = smov (%p29_p0, %s28_s20), 0  ;;  %p54_p5 = scmp.eq.s32.totalorder %s970_s18, 0 }
   0xb   : > { %p1275_p4 = por %p48_p2, %p47_p1  ;;  %s35_s23 = ssub.s32 %s1201_s16, %s1664_s20 }
   0xc   : > { %p131_p6 = scmp.eq.s32.totalorder %s970_s18, 1  ;;  %p38_p7 = scmp.eq.s32.totalorder %s35_s23, 0 }
   0xd   : > { %p1281_p8 = por %p54_p5, %p53_p3  ;;  %p137_p10 = scmp.eq.s32.totalorder %s971_s19, 1 }
   0xe   : > { %p1285_p9 = por %p131_p6, %p47_p1  ;;  %p1038_p13 = scmp.lt.s32.totalorder %s1205_s17, 2 }
   0xf   : > { %s1290_s26 = scalar_select %p38_p7, %s1193_s14, %s40_s21  }
  0x10   : > { %s1651_s25 = scalar_select %p1285_p9, 1, 0 }
  0x11   : > { %p1292_p11 = por %p137_p10, %p53_p3  ;;  %s166_s28 = sand.u32 1, %s1193_s14  }
  0x12   : > { %s975_s29 = sshll.u32 %s166_s28, 9  ;;  %s1023_s30 = sshll.u32 %s1201_s16, 13 }
  0x13   : > { %s1652_s27 = scalar_select %p1292_p11, 1, 0 }
  0x14   : > { %s1303_s6 = scalar_lea.hbm %s1644_s0, %s1023_s30  ;;  %s170_s7 = scalar_lea.vmem [#allocation2], %s975_s29 }
  0x15   : > { %s180_s8 = sshll.u32 %s170_s7, 4  ;;  %p1309_p0 = pnand %p1038_p13, %p1275_p4  ;;  %s1305_s8 = int_to_ptr.vmem [resolvable:$true] %s180_s8 }
  0x16   : > { %s1314_s10 = scalar_lea.sflag [#allocation3], %s166_s28  ;;  %s1093_s11 = scalar_lea.hbm %s1303_s6, 8192 }
  0x17   : > { %p1094_p2 = scmp.ne.s32.totalorder %s1303_s6, %s1093_s11  ;;  %p1095_p3 = pneg %p1309_p0 }
  0x18   : > { %s1098_s21 = scalar_lea.hbm %s1644_s0, 16384  ;;  %p1099_p4 = scmp.lt.u32.totalorder %s1303_s6, %s1644_s0 }
  0x19   : > { %p1096_p5 = pnand %p1095_p3, %p1094_p2  ;;  %p1100_p7 = scmp.lt.u32.totalorder %s1098_s21, %s1093_s11 }
  0x1a   : > { %p1102_p13 = scmp.lt.u32.totalorder %s1093_s11, %s1303_s6 }
  0x1b   : > { %p1097_p6 = pneg %p1096_p5  ;;  %p1101_p10 = por %p1100_p7, %p1099_p4 }
  0x1d   : > { %p1103_p12 = por %p1102_p13, %p1101_p10 }
  0x1f   : > { %p1104_p1 = pnand %p1103_p12, %p1097_p6 }
  0x21   : > { %1107 = shalt.err (!%p1104_p1)
}
  0x22   : > { %s1108_s28 = scalar_lea.vmem %s1305_s8, 8192  ;;  %s1207_s29 = smov [#allocation2]  }
  0x23   : > { %p1109_p2 = scmp.ne.s32.totalorder %s1305_s8, %s1108_s28  ;;  %s1113_s30 = sshll.u32 %s1207_s29, 4  ;;  %s1114_s30 = int_to_ptr.vmem [resolvable:$false] %s1113_s30 }
  0x24   : > { %s1115_s4 = scalar_lea.vmem %s1114_s30, 16384  ;;  %p1116_p9 = scmp.lt.s32.totalorder %s1305_s8, %s1114_s30 }
  0x25   : > { %p1111_p5 = pnand %p1109_p2, %p1095_p3  ;;  %p1117_p4 = scmp.lt.s32.totalorder %s1115_s4, %s1108_s28 }
  0x27   : > { %p1112_p11 = pneg %p1111_p5  ;;  %p1118_p7 = por %p1117_p4, %p1116_p9 }
  0x29   : > { %p1119_p10 = pnand %p1118_p7, %p1112_p11 }
  0x2b   : > { %1122 = shalt.err (!%p1119_p10)
}
  0x2c   : > { %s1208_s5 = smov 512   ;;  %s1209_s7 = smov 32  }
  0x2d   : > { %1033 = dma.hbm_to_vmem [thread:$0]  (!%p1309_p0), %s1303_s6, 8192, %s1305_s8, %s1314_s10, %s1208_s5, %s1208_s5, %s1209_s7  }
  0x2e   : > { %p197_p12 = scmp.lt.s32.totalorder %s1205_s17, 3  ;;  %p1654_p1 = scmp.ge.s32.totalorder %s1205_s17, 1 }
  0x30   : > { %p198_p3 = pnand %p1654_p1, %p197_p12 }
  0x31   : > { %s1346_s11 = sand.u32 (!%p198_p3), 1, %s1189_s13  }
  0x32   : > { %201 = sbr.rel (%p198_p3) target bundleno = 355 (0x163), region = 32  ;;  %s980_s18 = sshll.u32 (!%p198_p3), %s1346_s11, 9 }
  0x33   : > { %s204_s19 = scalar_lea.sflag (!%p198_p3), [#allocation3], %s1346_s11  ;;  %s1352_s21 = scalar_lea.vmem (!%p198_p3), [#allocation2], %s980_s18 }
  0x39   : > { %1176 = dma.done.wait (%p1281_p8), %s204_s19, 8192  }
  0x3a   : > { %1178 = vsyncadd (%p1281_p8), %s204_s19, 4294959104  ;;  %s982_s6 = sshll.u32 %s1197_s15, 4  ;;  %v1210_v0 = vmov 0.0   ;;  %v273_v1 = vld [vmem:[%s1646_s2 + $0x8] sm:$0xff]  ;;  %v275_v2 = vld [vmem:[%s1646_s2 + $0x18] sm:$0xff]  ;;  %vm276_vm0 = vcmask 64512  }
  0x3b   : > { %389 = vmatprep.mubr.f32.mxu0 %v1210_v0  ;;  %550 = vmatprep.mubr.f32.mxu1 %v1210_v0  ;;  %p243_p9 = scmp.lt.s32.totalorder %s982_s6, 31  ;;  %v272_v3 = vld [vmem:[%s1646_s2] sm:$0xff]  ;;  %v274_v4 = vld [vmem:[%s1646_s2 + $0x10] sm:$0xff]  ;;  %v648_v23 = vld [vmem:[%s1352_s21 + $0x8] sm:$0xff]  ;;  %s1464_s19 = scalar_lea.vmem [#allocation5], %s980_s18 }
  0x3c   : > { %325 = vmatprep.subr.mxu0 %v273_v1  ;;  %486 = vmatprep.subr.mxu1 %v275_v2  ;;  %v647_v21 = vld [vmem:[%s1352_s21] sm:$0xff]  ;;  %v649_v22 = vld [vmem:[%s1352_s21 + $0x10] sm:$0xff]  ;;  %v650_v24 = vld [vmem:[%s1352_s21 + $0x18] sm:$0xff]  ;;  %s1025_s18 = sshll.u32 %s1197_s15, 13  ;;  %p1655_p11 = scmp.ne.s32.totalorder %s1651_s25, 0 }
  0x3d   : > { %s1666_s6 = smov (!%p243_p9, %s982_s6), 31  ;;  %326 = vmatpush1.msra.mxu0 %v272_v3  ;;  %487 = vmatpush1.msra.mxu1 %v274_v4  ;;  %v651_v33 = vld [vmem:[%s1352_s21 + $0x20] sm:$0xff]  ;;  %v653_v34 = vld [vmem:[%s1352_s21 + $0x30] sm:$0xff]  ;;  %v652_v35 = vld [vmem:[%s1352_s21 + $0x28] sm:$0xff]  ;;  %s1589_s9 = scalar_lea.hbm %s1647_s3, %s1025_s18 }
  0x3e   : > { %s983_s8 = sshll.u32 %s1666_s6, 3  ;;  %v654_v36 = vld [vmem:[%s1352_s21 + $0x38] sm:$0xff]  ;;  %v655_v45 = vld [vmem:[%s1352_s21 + $0x40] sm:$0xff]  ;;  %v657_v46 = vld [vmem:[%s1352_s21 + $0x50] sm:$0xff]  ;;  %s856_s6 = sshll.u32 %s1464_s19, 4  ;;  %s1591_s6 = int_to_ptr.vmem [resolvable:$true] %s856_s6 }
  0x3f   : > { %s1364_s22 = scalar_lea.vmem %s1645_s1, %s983_s8  ;;  %v656_v47 = vld [vmem:[%s1352_s21 + $0x48] sm:$0xff]  ;;  %v658_v48 = vld [vmem:[%s1352_s21 + $0x58] sm:$0xff]  ;;  %v659_v57 = vld [vmem:[%s1352_s21 + $0x60] sm:$0xff]  ;;  %s1123_s10 = scalar_lea.vmem %s1591_s6, 8192 }
  0x40   : > { %v256_v5 = vld [vmem:[%s1364_s22] sm:$0xff]  ;;  %v257_v6 = vld [vmem:[%s1364_s22 + $0x8] sm:$0xff]  ;;  %v258_v7 = vld [vmem:[%s1364_s22 + $0x10] sm:$0xff]  ;;  %p1124_p8 = scmp.ne.s32.totalorder %s1591_s6, %s1123_s10 }
  0x41   : > { %984 = vmatmul.mubr.msk.f32.vlgmr.msra.gmra.mrb[0].mxu0 %vm276_vm0, %v256_v5  ;;  %1000 = vmatmul.mubr.msk.f32.vlgmr.msra.gmra.mrb[0].mxu1 %vm276_vm0, %v256_v5  ;;  %v259_v8 = vld [vmem:[%s1364_s22 + $0x18] sm:$0xff]  ;;  %v260_v9 = vld [vmem:[%s1364_s22 + $0x20] sm:$0xff]  ;;  %v261_v10 = vld [vmem:[%s1364_s22 + $0x28] sm:$0xff] }
  0x42   : > { %395 = vmatprep.mubr.f32.mxu0 %v1210_v0  ;;  %556 = vmatprep.mubr.f32.mxu1 %v1210_v0  ;;  %v262_v11 = vld [vmem:[%s1364_s22 + $0x30] sm:$0xff]  ;;  %v263_v12 = vld [vmem:[%s1364_s22 + $0x38] sm:$0xff]  ;;  %v264_v13 = vld [vmem:[%s1364_s22 + $0x40] sm:$0xff]  ;;  %p1125_p0 = pnand %p1124_p8, %p1655_p11 }
  0x43   : > { %v265_v14 = vld [vmem:[%s1364_s22 + $0x48] sm:$0xff]  ;;  %v266_v15 = vld [vmem:[%s1364_s22 + $0x50] sm:$0xff]  ;;  %v267_v16 = vld [vmem:[%s1364_s22 + $0x58] sm:$0xff] }
  0x44   : > { %v268_v17 = vld [vmem:[%s1364_s22 + $0x60] sm:$0xff]  ;;  %v269_v18 = vld [vmem:[%s1364_s22 + $0x68] sm:$0xff]  ;;  %v270_v19 = vld [vmem:[%s1364_s22 + $0x70] sm:$0xff]  ;;  %p1126_p6 = pneg %p1125_p0 }
  0x45   : > { %985 = vmatmul.mubr.msk.f32.gmra.mrb[2].mxu0 %vm276_vm0, %v257_v6  ;;  %1001 = vmatmul.mubr.msk.f32.gmra.mrb[2].mxu1 %vm276_vm0, %v257_v6  ;;  %v271_v20 = vld [vmem:[%s1364_s22 + $0x78] sm:$0xff]  ;;  %v661_v58 = vld [vmem:[%s1352_s21 + $0x70] sm:$0xff]  ;;  %v660_v59 = vld [vmem:[%s1352_s21 + $0x68] sm:$0xff]  ;;  %s1211_s22 = smov [#allocation5]  }
  0x46   : > { %401 = vmatprep.mubr.f32.mxu0 %v1210_v0  ;;  %562 = vmatprep.mubr.f32.mxu1 %v1210_v0  ;;  %v662_v60 = vld [vmem:[%s1352_s21 + $0x78] sm:$0xff]  ;;  %v663_v5 = vld [vmem:[%s1352_s21 + $0x80] sm:$0xff]  ;;  %v665_v6 = vld [vmem:[%s1352_s21 + $0x90] sm:$0xff]  ;;  %s1127_s23 = sshll.u32 %s1211_s22, 4  ;;  %s1128_s23 = int_to_ptr.vmem [resolvable:$false] %s1127_s23 }
  0x47   : > { %s1129_s28 = scalar_lea.vmem %s1128_s23, 16384  ;;  %p1130_p13 = scmp.lt.s32.totalorder %s1591_s6, %s1128_s23 }
  0x48   : > { %p1131_p2 = scmp.lt.s32.totalorder %s1129_s28, %s1123_s10 }
  0x49   : > { %986 = vmatmul.mubr.msk.f32.gmra.mrb[4].mxu0 %vm276_vm0, %v258_v7  ;;  %1002 = vmatmul.mubr.msk.f32.gmra.mrb[4].mxu1 %vm276_vm0, %v258_v7  ;;  %v664_v7 = vld [vmem:[%s1352_s21 + $0x88] sm:$0xff] }
  0x4a   : > { %407 = vmatprep.mubr.f32.mxu0 %v1210_v0  ;;  %568 = vmatprep.mubr.f32.mxu1 %v1210_v0  ;;  %p1132_p5 = por %p1131_p2, %p1130_p13 }
  0x4c   : > { %p1133_p4 = pnand %p1132_p5, %p1126_p6 }
  0x4d   : > { %987 = vmatmul.mubr.msk.f32.gmra.mrb[6].mxu0 %vm276_vm0, %v259_v8  ;;  %1003 = vmatmul.mubr.msk.f32.gmra.mrb[6].mxu1 %vm276_vm0, %v259_v8  ;;  %v666_v8 = vld [vmem:[%s1352_s21 + $0x98] sm:$0xff] }
  0x4e   : > { %413 = vmatprep.mubr.f32.mxu0 %v1210_v0  ;;  %574 = vmatprep.mubr.f32.mxu1 %v1210_v0 }
  0x51   : > { %988 = vmatmul.mubr.msk.f32.gmra.mrb[8].mxu0 %vm276_vm0, %v260_v9  ;;  %1004 = vmatmul.mubr.msk.f32.gmra.mrb[8].mxu1 %vm276_vm0, %v260_v9 }
  0x52   : > { %419 = vmatprep.mubr.f32.mxu0 %v1210_v0  ;;  %580 = vmatprep.mubr.f32.mxu1 %v1210_v0 }
  0x55   : > { %989 = vmatmul.mubr.msk.f32.gmra.mrb[10].mxu0 %vm276_vm0, %v261_v10  ;;  %1005 = vmatmul.mubr.msk.f32.gmra.mrb[10].mxu1 %vm276_vm0, %v261_v10 }
  0x56   : > { %425 = vmatprep.mubr.f32.mxu0 %v1210_v0  ;;  %586 = vmatprep.mubr.f32.mxu1 %v1210_v0 }
  0x59   : > { %990 = vmatmul.mubr.msk.f32.gmra.mrb[12].mxu0 %vm276_vm0, %v262_v11  ;;  %1006 = vmatmul.mubr.msk.f32.gmra.mrb[12].mxu1 %vm276_vm0, %v262_v11 }
  0x5a   : > { %431 = vmatprep.mubr.f32.mxu0 %v1210_v0  ;;  %592 = vmatprep.mubr.f32.mxu1 %v1210_v0 }
  0x5d   : > { %991 = vmatmul.mubr.msk.f32.gmra.mrb[14].mxu0 %vm276_vm0, %v263_v12  ;;  %1007 = vmatmul.mubr.msk.f32.gmra.mrb[14].mxu1 %vm276_vm0, %v263_v12 }
  0x5e   : > { %437 = vmatprep.mubr.f32.mxu0 %v1210_v0  ;;  %598 = vmatprep.mubr.f32.mxu1 %v1210_v0 }
  0x61   : > { %992 = vmatmul.mubr.msk.f32.gmra.mrb[16].mxu0 %vm276_vm0, %v264_v13  ;;  %1008 = vmatmul.mubr.msk.f32.gmra.mrb[16].mxu1 %vm276_vm0, %v264_v13 }
  0x62   : > { %443 = vmatprep.mubr.f32.mxu0 %v1210_v0  ;;  %604 = vmatprep.mubr.f32.mxu1 %v1210_v0 }
  0x65   : > { %993 = vmatmul.mubr.msk.f32.gmra.mrb[18].mxu0 %vm276_vm0, %v265_v14  ;;  %1009 = vmatmul.mubr.msk.f32.gmra.mrb[18].mxu1 %vm276_vm0, %v265_v14 }
  0x66   : > { %449 = vmatprep.mubr.f32.mxu0 %v1210_v0  ;;  %610 = vmatprep.mubr.f32.mxu1 %v1210_v0 }
  0x69   : > { %994 = vmatmul.mubr.msk.f32.gmra.mrb[20].mxu0 %vm276_vm0, %v266_v15  ;;  %1010 = vmatmul.mubr.msk.f32.gmra.mrb[20].mxu1 %vm276_vm0, %v266_v15 }
  0x6a   : > { %455 = vmatprep.mubr.f32.mxu0 %v1210_v0  ;;  %616 = vmatprep.mubr.f32.mxu1 %v1210_v0 }
  0x6d   : > { %995 = vmatmul.mubr.msk.f32.gmra.mrb[22].mxu0 %vm276_vm0, %v267_v16  ;;  %1011 = vmatmul.mubr.msk.f32.gmra.mrb[22].mxu1 %vm276_vm0, %v267_v16 }
  0x6e   : > { %461 = vmatprep.mubr.f32.mxu0 %v1210_v0  ;;  %622 = vmatprep.mubr.f32.mxu1 %v1210_v0 }
  0x71   : > { %996 = vmatmul.mubr.msk.f32.gmra.mrb[24].mxu0 %vm276_vm0, %v268_v17  ;;  %1012 = vmatmul.mubr.msk.f32.gmra.mrb[24].mxu1 %vm276_vm0, %v268_v17  ;;  %v667_v17 = vld [vmem:[%s1352_s21 + $0xa0] sm:$0xff] }
  0x72   : > { %467 = vmatprep.mubr.f32.mxu0 %v1210_v0  ;;  %628 = vmatprep.mubr.f32.mxu1 %v1210_v0 }
  0x75   : > { %997 = vmatmul.mubr.msk.f32.gmra.mrb[26].mxu0 %vm276_vm0, %v269_v18  ;;  %1013 = vmatmul.mubr.msk.f32.gmra.mrb[26].mxu1 %vm276_vm0, %v269_v18  ;;  %v669_v18 = vld [vmem:[%s1352_s21 + $0xb0] sm:$0xff] }
  0x76   : > { %473 = vmatprep.mubr.f32.mxu0 %v1210_v0  ;;  %634 = vmatprep.mubr.f32.mxu1 %v1210_v0 }
  0x79   : > { %998 = vmatmul.mubr.msk.f32.gmra.mrb[28].mxu0 %vm276_vm0, %v270_v19  ;;  %1014 = vmatmul.mubr.msk.f32.gmra.mrb[28].mxu1 %vm276_vm0, %v270_v19  ;;  %v668_v19 = vld [vmem:[%s1352_s21 + $0xa8] sm:$0xff] }
  0x7a   : > { %479 = vmatprep.mubr.f32.mxu0 %v1210_v0  ;;  %640 = vmatprep.mubr.f32.mxu1 %v1210_v0 }
  0x7d   : > { %999 = vmatmul.mubr.msk.f32.gmra.mrb[30].mxu0 %vm276_vm0, %v271_v20  ;;  %1015 = vmatmul.mubr.msk.f32.gmra.mrb[30].mxu1 %vm276_vm0, %v271_v20  ;;  %v670_v20 = vld [vmem:[%s1352_s21 + $0xb8] sm:$0xff] }
 0x114   : > { %v391_v25 = vpop.f32.mrb[0].mxu0  ;;  %v552_v26 = vpop.f32.mrb[0].mxu1 }
 0x115   : > { %v711_v27 = vadd.f32 %v647_v21, %v391_v25  ;;  %v713_v28 = vadd.f32 %v649_v22, %v552_v26  ;;  %v393_v29 = vpop.f32.mrb[1].mxu0  ;;  %v554_v30 = vpop.f32.mrb[1].mxu1 }
 0x116   : > { %v712_v31 = vadd.f32 %v648_v23, %v393_v29  ;;  %v714_v32 = vadd.f32 %v650_v24, %v554_v30  ;;  %v671_v29 = vld [vmem:[%s1352_s21 + $0xc0] sm:$0xff]  ;;  %v673_v30 = vld [vmem:[%s1352_s21 + $0xd0] sm:$0xff] }
 0x117   : > { %775 = vst [vmem:[%s1464_s19] sm:$0xff] %v711_v27  ;;  %777 = vst [vmem:[%s1464_s19 + $0x10] sm:$0xff] %v713_v28 }
 0x118   : > { %776 = vst [vmem:[%s1464_s19 + $0x8] sm:$0xff] %v712_v31  ;;  %778 = vst [vmem:[%s1464_s19 + $0x18] sm:$0xff] %v714_v32  ;;  %v397_v37 = vpop.f32.mrb[2].mxu0  ;;  %v558_v38 = vpop.f32.mrb[2].mxu1  ;;  %v672_v31 = vld [vmem:[%s1352_s21 + $0xc8] sm:$0xff]  ;;  %v674_v32 = vld [vmem:[%s1352_s21 + $0xd8] sm:$0xff] }
 0x119   : > { %v715_v39 = vadd.f32 %v651_v33, %v397_v37  ;;  %v717_v40 = vadd.f32 %v653_v34, %v558_v38  ;;  %v399_v41 = vpop.f32.mrb[3].mxu0  ;;  %v560_v42 = vpop.f32.mrb[3].mxu1 }
 0x11a   : > { %v716_v43 = vadd.f32 %v652_v35, %v399_v41  ;;  %v718_v44 = vadd.f32 %v654_v36, %v560_v42  ;;  %v675_v41 = vld [vmem:[%s1352_s21 + $0xe0] sm:$0xff]  ;;  %v677_v42 = vld [vmem:[%s1352_s21 + $0xf0] sm:$0xff] }
 0x11b   : > { %779 = vst [vmem:[%s1464_s19 + $0x20] sm:$0xff] %v715_v39  ;;  %781 = vst [vmem:[%s1464_s19 + $0x30] sm:$0xff] %v717_v40 }
 0x11c   : > { %780 = vst [vmem:[%s1464_s19 + $0x28] sm:$0xff] %v716_v43  ;;  %782 = vst [vmem:[%s1464_s19 + $0x38] sm:$0xff] %v718_v44  ;;  %v403_v49 = vpop.f32.mrb[4].mxu0  ;;  %v564_v50 = vpop.f32.mrb[4].mxu1  ;;  %v676_v43 = vld [vmem:[%s1352_s21 + $0xe8] sm:$0xff]  ;;  %v678_v44 = vld [vmem:[%s1352_s21 + $0xf8] sm:$0xff] }
 0x11d   : > { %v719_v51 = vadd.f32 %v655_v45, %v403_v49  ;;  %v721_v52 = vadd.f32 %v657_v46, %v564_v50  ;;  %v405_v53 = vpop.f32.mrb[5].mxu0  ;;  %v566_v54 = vpop.f32.mrb[5].mxu1 }
 0x11e   : > { %v720_v55 = vadd.f32 %v656_v47, %v405_v53  ;;  %v722_v56 = vadd.f32 %v658_v48, %v566_v54  ;;  %v679_v53 = vld [vmem:[%s1352_s21 + $0x100] sm:$0xff]  ;;  %v681_v54 = vld [vmem:[%s1352_s21 + $0x110] sm:$0xff] }
 0x11f   : > { %783 = vst [vmem:[%s1464_s19 + $0x40] sm:$0xff] %v719_v51  ;;  %785 = vst [vmem:[%s1464_s19 + $0x50] sm:$0xff] %v721_v52 }
 0x120   : > { %784 = vst [vmem:[%s1464_s19 + $0x48] sm:$0xff] %v720_v55  ;;  %786 = vst [vmem:[%s1464_s19 + $0x58] sm:$0xff] %v722_v56  ;;  %v409_v61 = vpop.f32.mrb[6].mxu0  ;;  %v570_v62 = vpop.f32.mrb[6].mxu1  ;;  %v680_v55 = vld [vmem:[%s1352_s21 + $0x108] sm:$0xff]  ;;  %v682_v56 = vld [vmem:[%s1352_s21 + $0x118] sm:$0xff] }
 0x121   : > { %v723_v63 = vadd.f32 %v659_v57, %v409_v61  ;;  %v725_v0 = vadd.f32 %v661_v58, %v570_v62  ;;  %v411_v1 = vpop.f32.mrb[7].mxu0  ;;  %v572_v2 = vpop.f32.mrb[7].mxu1 }
 0x122   : > { %v724_v3 = vadd.f32 %v660_v59, %v411_v1  ;;  %v726_v4 = vadd.f32 %v662_v60, %v572_v2  ;;  %v683_v1 = vld [vmem:[%s1352_s21 + $0x120] sm:$0xff]  ;;  %v685_v2 = vld [vmem:[%s1352_s21 + $0x130] sm:$0xff] }
 0x123   : > { %787 = vst [vmem:[%s1464_s19 + $0x60] sm:$0xff] %v723_v63  ;;  %789 = vst [vmem:[%s1464_s19 + $0x70] sm:$0xff] %v725_v0 }
 0x124   : > { %788 = vst [vmem:[%s1464_s19 + $0x68] sm:$0xff] %v724_v3  ;;  %790 = vst [vmem:[%s1464_s19 + $0x78] sm:$0xff] %v726_v4  ;;  %v415_v9 = vpop.f32.mrb[8].mxu0  ;;  %v576_v10 = vpop.f32.mrb[8].mxu1  ;;  %v684_v3 = vld [vmem:[%s1352_s21 + $0x128] sm:$0xff]  ;;  %v686_v4 = vld [vmem:[%s1352_s21 + $0x138] sm:$0xff] }
 0x125   : > { %v727_v11 = vadd.f32 %v663_v5, %v415_v9  ;;  %v729_v12 = vadd.f32 %v665_v6, %v576_v10  ;;  %v417_v13 = vpop.f32.mrb[9].mxu0  ;;  %v578_v14 = vpop.f32.mrb[9].mxu1 }
 0x126   : > { %v728_v15 = vadd.f32 %v664_v7, %v417_v13  ;;  %v730_v16 = vadd.f32 %v666_v8, %v578_v14  ;;  %v687_v13 = vld [vmem:[%s1352_s21 + $0x140] sm:$0xff]  ;;  %v689_v14 = vld [vmem:[%s1352_s21 + $0x150] sm:$0xff] }
 0x127   : > { %791 = vst [vmem:[%s1464_s19 + $0x80] sm:$0xff] %v727_v11  ;;  %793 = vst [vmem:[%s1464_s19 + $0x90] sm:$0xff] %v729_v12 }
 0x128   : > { %792 = vst [vmem:[%s1464_s19 + $0x88] sm:$0xff] %v728_v15  ;;  %794 = vst [vmem:[%s1464_s19 + $0x98] sm:$0xff] %v730_v16  ;;  %v421_v21 = vpop.f32.mrb[10].mxu0  ;;  %v582_v22 = vpop.f32.mrb[10].mxu1  ;;  %v688_v15 = vld [vmem:[%s1352_s21 + $0x148] sm:$0xff]  ;;  %v690_v16 = vld [vmem:[%s1352_s21 + $0x158] sm:$0xff] }
 0x129   : > { %v731_v23 = vadd.f32 %v667_v17, %v421_v21  ;;  %v733_v24 = vadd.f32 %v669_v18, %v582_v22  ;;  %v423_v25 = vpop.f32.mrb[11].mxu0  ;;  %v584_v26 = vpop.f32.mrb[11].mxu1 }
 0x12a   : > { %v732_v27 = vadd.f32 %v668_v19, %v423_v25  ;;  %v734_v28 = vadd.f32 %v670_v20, %v584_v26  ;;  %v691_v25 = vld [vmem:[%s1352_s21 + $0x160] sm:$0xff]  ;;  %v693_v26 = vld [vmem:[%s1352_s21 + $0x170] sm:$0xff] }
 0x12b   : > { %795 = vst [vmem:[%s1464_s19 + $0xa0] sm:$0xff] %v731_v23  ;;  %797 = vst [vmem:[%s1464_s19 + $0xb0] sm:$0xff] %v733_v24 }
 0x12c   : > { %796 = vst [vmem:[%s1464_s19 + $0xa8] sm:$0xff] %v732_v27  ;;  %798 = vst [vmem:[%s1464_s19 + $0xb8] sm:$0xff] %v734_v28  ;;  %v427_v33 = vpop.f32.mrb[12].mxu0  ;;  %v588_v34 = vpop.f32.mrb[12].mxu1  ;;  %v692_v27 = vld [vmem:[%s1352_s21 + $0x168] sm:$0xff]  ;;  %v694_v28 = vld [vmem:[%s1352_s21 + $0x178] sm:$0xff] }
 0x12d   : > { %v735_v35 = vadd.f32 %v671_v29, %v427_v33  ;;  %v737_v36 = vadd.f32 %v673_v30, %v588_v34  ;;  %v429_v37 = vpop.f32.mrb[13].mxu0  ;;  %v590_v38 = vpop.f32.mrb[13].mxu1 }
 0x12e   : > { %v736_v39 = vadd.f32 %v672_v31, %v429_v37  ;;  %v738_v40 = vadd.f32 %v674_v32, %v590_v38  ;;  %v695_v37 = vld [vmem:[%s1352_s21 + $0x180] sm:$0xff]  ;;  %v697_v38 = vld [vmem:[%s1352_s21 + $0x190] sm:$0xff] }
 0x12f   : > { %799 = vst [vmem:[%s1464_s19 + $0xc0] sm:$0xff] %v735_v35  ;;  %801 = vst [vmem:[%s1464_s19 + $0xd0] sm:$0xff] %v737_v36 }
 0x130   : > { %800 = vst [vmem:[%s1464_s19 + $0xc8] sm:$0xff] %v736_v39  ;;  %802 = vst [vmem:[%s1464_s19 + $0xd8] sm:$0xff] %v738_v40  ;;  %v433_v45 = vpop.f32.mrb[14].mxu0  ;;  %v594_v46 = vpop.f32.mrb[14].mxu1  ;;  %v696_v39 = vld [vmem:[%s1352_s21 + $0x188] sm:$0xff]  ;;  %v698_v40 = vld [vmem:[%s1352_s21 + $0x198] sm:$0xff] }
 0x131   : > { %v739_v47 = vadd.f32 %v675_v41, %v433_v45  ;;  %v741_v48 = vadd.f32 %v677_v42, %v594_v46  ;;  %v435_v49 = vpop.f32.mrb[15].mxu0  ;;  %v596_v50 = vpop.f32.mrb[15].mxu1 }
 0x132   : > { %v740_v51 = vadd.f32 %v676_v43, %v435_v49  ;;  %v742_v52 = vadd.f32 %v678_v44, %v596_v50  ;;  %v699_v49 = vld [vmem:[%s1352_s21 + $0x1a0] sm:$0xff]  ;;  %v701_v50 = vld [vmem:[%s1352_s21 + $0x1b0] sm:$0xff] }
 0x133   : > { %803 = vst [vmem:[%s1464_s19 + $0xe0] sm:$0xff] %v739_v47  ;;  %805 = vst [vmem:[%s1464_s19 + $0xf0] sm:$0xff] %v741_v48 }
 0x134   : > { %804 = vst [vmem:[%s1464_s19 + $0xe8] sm:$0xff] %v740_v51  ;;  %806 = vst [vmem:[%s1464_s19 + $0xf8] sm:$0xff] %v742_v52  ;;  %v439_v57 = vpop.f32.mrb[16].mxu0  ;;  %v600_v58 = vpop.f32.mrb[16].mxu1  ;;  %v700_v51 = vld [vmem:[%s1352_s21 + $0x1a8] sm:$0xff]  ;;  %v702_v52 = vld [vmem:[%s1352_s21 + $0x1b8] sm:$0xff] }
 0x135   : > { %v743_v59 = vadd.f32 %v679_v53, %v439_v57  ;;  %v745_v60 = vadd.f32 %v681_v54, %v600_v58  ;;  %v441_v61 = vpop.f32.mrb[17].mxu0  ;;  %v602_v62 = vpop.f32.mrb[17].mxu1 }
 0x136   : > { %v744_v63 = vadd.f32 %v680_v55, %v441_v61  ;;  %v746_v0 = vadd.f32 %v682_v56, %v602_v62  ;;  %v703_v61 = vld [vmem:[%s1352_s21 + $0x1c0] sm:$0xff]  ;;  %v705_v62 = vld [vmem:[%s1352_s21 + $0x1d0] sm:$0xff] }
 0x137   : > { %807 = vst [vmem:[%s1464_s19 + $0x100] sm:$0xff] %v743_v59  ;;  %809 = vst [vmem:[%s1464_s19 + $0x110] sm:$0xff] %v745_v60 }
 0x138   : > { %808 = vst [vmem:[%s1464_s19 + $0x108] sm:$0xff] %v744_v63  ;;  %810 = vst [vmem:[%s1464_s19 + $0x118] sm:$0xff] %v746_v0  ;;  %v445_v5 = vpop.f32.mrb[18].mxu0  ;;  %v606_v6 = vpop.f32.mrb[18].mxu1  ;;  %v704_v63 = vld [vmem:[%s1352_s21 + $0x1c8] sm:$0xff]  ;;  %v706_v0 = vld [vmem:[%s1352_s21 + $0x1d8] sm:$0xff] }
 0x139   : > { %v747_v7 = vadd.f32 %v683_v1, %v445_v5  ;;  %v749_v8 = vadd.f32 %v685_v2, %v606_v6  ;;  %v447_v9 = vpop.f32.mrb[19].mxu0  ;;  %v608_v10 = vpop.f32.mrb[19].mxu1 }
 0x13a   : > { %v748_v11 = vadd.f32 %v684_v3, %v447_v9  ;;  %v750_v12 = vadd.f32 %v686_v4, %v608_v10  ;;  %v707_v9 = vld [vmem:[%s1352_s21 + $0x1e0] sm:$0xff]  ;;  %v709_v10 = vld [vmem:[%s1352_s21 + $0x1f0] sm:$0xff] }
 0x13b   : > { %811 = vst [vmem:[%s1464_s19 + $0x120] sm:$0xff] %v747_v7  ;;  %813 = vst [vmem:[%s1464_s19 + $0x130] sm:$0xff] %v749_v8 }
 0x13c   : > { %812 = vst [vmem:[%s1464_s19 + $0x128] sm:$0xff] %v748_v11  ;;  %814 = vst [vmem:[%s1464_s19 + $0x138] sm:$0xff] %v750_v12  ;;  %v451_v17 = vpop.f32.mrb[20].mxu0  ;;  %v612_v18 = vpop.f32.mrb[20].mxu1  ;;  %v708_v11 = vld [vmem:[%s1352_s21 + $0x1e8] sm:$0xff]  ;;  %v710_v12 = vld [vmem:[%s1352_s21 + $0x1f8] sm:$0xff] }
 0x13d   : > { %v751_v19 = vadd.f32 %v687_v13, %v451_v17  ;;  %v753_v20 = vadd.f32 %v689_v14, %v612_v18  ;;  %v453_v21 = vpop.f32.mrb[21].mxu0  ;;  %v614_v22 = vpop.f32.mrb[21].mxu1  ;;  %s840_s21 = scalar_lea.sflag [#allocation4], %s1346_s11 }
 0x13e   : > { %v752_v23 = vadd.f32 %v688_v15, %v453_v21  ;;  %v754_v24 = vadd.f32 %v690_v16, %v614_v22 }
 0x13f   : > { %815 = vst [vmem:[%s1464_s19 + $0x140] sm:$0xff] %v751_v19  ;;  %817 = vst [vmem:[%s1464_s19 + $0x150] sm:$0xff] %v753_v20 }
 0x140   : > { %816 = vst [vmem:[%s1464_s19 + $0x148] sm:$0xff] %v752_v23  ;;  %818 = vst [vmem:[%s1464_s19 + $0x158] sm:$0xff] %v754_v24  ;;  %v457_v29 = vpop.f32.mrb[22].mxu0  ;;  %v618_v30 = vpop.f32.mrb[22].mxu1 }
 0x141   : > { %v755_v31 = vadd.f32 %v691_v25, %v457_v29  ;;  %v757_v32 = vadd.f32 %v693_v26, %v618_v30  ;;  %v459_v33 = vpop.f32.mrb[23].mxu0  ;;  %v620_v34 = vpop.f32.mrb[23].mxu1 }
 0x142   : > { %v756_v35 = vadd.f32 %v692_v27, %v459_v33  ;;  %v758_v36 = vadd.f32 %v694_v28, %v620_v34 }
 0x143   : > { %819 = vst [vmem:[%s1464_s19 + $0x160] sm:$0xff] %v755_v31  ;;  %821 = vst [vmem:[%s1464_s19 + $0x170] sm:$0xff] %v757_v32 }
 0x144   : > { %820 = vst [vmem:[%s1464_s19 + $0x168] sm:$0xff] %v756_v35  ;;  %822 = vst [vmem:[%s1464_s19 + $0x178] sm:$0xff] %v758_v36  ;;  %v463_v41 = vpop.f32.mrb[24].mxu0  ;;  %v624_v42 = vpop.f32.mrb[24].mxu1 }
 0x145   : > { %v759_v43 = vadd.f32 %v695_v37, %v463_v41  ;;  %v761_v44 = vadd.f32 %v697_v38, %v624_v42  ;;  %v465_v45 = vpop.f32.mrb[25].mxu0  ;;  %v626_v46 = vpop.f32.mrb[25].mxu1 }
 0x146   : > { %v760_v47 = vadd.f32 %v696_v39, %v465_v45  ;;  %v762_v48 = vadd.f32 %v698_v40, %v626_v46 }
 0x147   : > { %823 = vst [vmem:[%s1464_s19 + $0x180] sm:$0xff] %v759_v43  ;;  %825 = vst [vmem:[%s1464_s19 + $0x190] sm:$0xff] %v761_v44 }
 0x148   : > { %824 = vst [vmem:[%s1464_s19 + $0x188] sm:$0xff] %v760_v47  ;;  %826 = vst [vmem:[%s1464_s19 + $0x198] sm:$0xff] %v762_v48  ;;  %v469_v53 = vpop.f32.mrb[26].mxu0  ;;  %v630_v54 = vpop.f32.mrb[26].mxu1 }
 0x149   : > { %v763_v55 = vadd.f32 %v699_v49, %v469_v53  ;;  %v765_v56 = vadd.f32 %v701_v50, %v630_v54  ;;  %v471_v57 = vpop.f32.mrb[27].mxu0  ;;  %v632_v58 = vpop.f32.mrb[27].mxu1 }
 0x14a   : > { %v764_v59 = vadd.f32 %v700_v51, %v471_v57  ;;  %v766_v60 = vadd.f32 %v702_v52, %v632_v58 }
 0x14b   : > { %827 = vst [vmem:[%s1464_s19 + $0x1a0] sm:$0xff] %v763_v55  ;;  %829 = vst [vmem:[%s1464_s19 + $0x1b0] sm:$0xff] %v765_v56 }
 0x14c   : > { %828 = vst [vmem:[%s1464_s19 + $0x1a8] sm:$0xff] %v764_v59  ;;  %830 = vst [vmem:[%s1464_s19 + $0x1b8] sm:$0xff] %v766_v60  ;;  %v475_v1 = vpop.f32.mrb[28].mxu0  ;;  %v636_v2 = vpop.f32.mrb[28].mxu1 }
 0x14d   : > { %v767_v3 = vadd.f32 %v703_v61, %v475_v1  ;;  %v769_v4 = vadd.f32 %v705_v62, %v636_v2  ;;  %v477_v5 = vpop.f32.mrb[29].mxu0  ;;  %v638_v6 = vpop.f32.mrb[29].mxu1 }
 0x14e   : > { %v768_v7 = vadd.f32 %v704_v63, %v477_v5  ;;  %v770_v8 = vadd.f32 %v706_v0, %v638_v6 }
 0x14f   : > { %831 = vst [vmem:[%s1464_s19 + $0x1c0] sm:$0xff] %v767_v3  ;;  %833 = vst [vmem:[%s1464_s19 + $0x1d0] sm:$0xff] %v769_v4 }
 0x150   : > { %832 = vst [vmem:[%s1464_s19 + $0x1c8] sm:$0xff] %v768_v7  ;;  %834 = vst [vmem:[%s1464_s19 + $0x1d8] sm:$0xff] %v770_v8  ;;  %v481_v13 = vpop.f32.mrb[30].mxu0  ;;  %v642_v14 = vpop.f32.mrb[30].mxu1 }
 0x151   : > { %v771_v15 = vadd.f32 %v707_v9, %v481_v13  ;;  %v773_v16 = vadd.f32 %v709_v10, %v642_v14  ;;  %v483_v17 = vpop.f32.mrb[31].mxu0  ;;  %v644_v18 = vpop.f32.mrb[31].mxu1 }
 0x152   : > { %v772_v19 = vadd.f32 %v708_v11, %v483_v17  ;;  %v774_v20 = vadd.f32 %v710_v12, %v644_v18 }
 0x153   : > { %835 = vst [vmem:[%s1464_s19 + $0x1e0] sm:$0xff] %v771_v15  ;;  %837 = vst [vmem:[%s1464_s19 + $0x1f0] sm:$0xff] %v773_v16 }
 0x154   : > { %836 = vst [vmem:[%s1464_s19 + $0x1e8] sm:$0xff] %v772_v19  ;;  %838 = vst [vmem:[%s1464_s19 + $0x1f8] sm:$0xff] %v774_v20 }
 0x155   : > { %1136 = shalt.err (!%p1133_p4)
}
 0x156   : > { %s1137_s24 = scalar_lea.hbm %s1589_s9, 8192  ;;  %s1141_s4 = scalar_lea.hbm %s1647_s3, 16384 }
 0x157   : > { %p1138_p7 = scmp.ne.s32.totalorder %s1589_s9, %s1137_s24  ;;  %p1142_p1 = scmp.lt.u32.totalorder %s1589_s9, %s1647_s3 }
 0x158   : > { %p1143_p3 = scmp.lt.u32.totalorder %s1141_s4, %s1137_s24  ;;  %p1145_p8 = scmp.lt.u32.totalorder %s1137_s24, %s1589_s9 }
 0x159   : > { %p1139_p10 = pnand %p1138_p7, %p1655_p11 }
 0x15a   : > { %p1144_p9 = por %p1143_p3, %p1142_p1 }
 0x15b   : > { %p1140_p12 = pneg %p1139_p10 }
 0x15c   : > { %p1146_p0 = por %p1145_p8, %p1144_p9 }
 0x15e   : > { %p1147_p6 = pnand %p1146_p0, %p1140_p12 }
 0x160   : > { %1150 = shalt.err (!%p1147_p6)
}
 0x161   : > { %s1212_s19 = smov 512   ;;  %s1213_s18 = smov 32  }
 0x162   : > { %1028 = dma.vmem_to_hbm [thread:$0]  (%p1655_p11), %s1591_s6, 8192, %s1589_s9, %s840_s21, %s1212_s19, %s1212_s19, %s1213_s18  }
 0x163 PF: > { %s871_s15 = sand.u32 1, %s1185_s12   ;;  %p1656_p13 = scmp.ne.s32.totalorder %s1652_s27, 0 }
 0x164   : > { %p1657_p2 = scmp.ge.s32.totalorder %s1205_s17, 2  ;;  %s872_s8 = scalar_lea.sflag [#allocation4], %s871_s15 }
 0x166   : > { %p1035_p5 = pnand %p1657_p2, %p1656_p13 }
 0x168   : > { %1180 = dma.done.wait (!%p1035_p5), %s872_s8, 8192  }
 0x169   : > { %1182 = vsyncadd (!%p1035_p5), %s872_s8, 4294959104  ;;  %s19_s17 = sadd.s32 1, %s1205_s17   ;;  %s1658_s12 = smov %s1189_s13 }
 0x16a   : > { %p16_p4 = scmp.ge.s32.totalorder %s19_s17, 4   ;;  %s1659_s13 = smov %s1193_s14 }
 0x16b   : > { %s1660_s14 = smov %s1290_s26  ;;  %s1661_s15 = smov %s1201_s16 }
 0x16c   : > { %s1662_s16 = smov %s1664_s20  ;;  %18 = sbr.rel (!%p16_p4) target bundleno = 6 (0x6), region = 83 }
 0x173   :  { %877 = vsyncpa [#allocation3], 1 }
 0x174   :  { %879 = vsyncpa [#allocation3 + $0x1], 1 }
 0x175   :  { %880 = vsyncpa [#allocation4], 1 }
 0x176   :  { %882 = vsyncpa [#allocation4 + $0x1], 1 }

</bundles_post_ra>
